<compile_context>
chip_gen: v7x
topology: tpu7x:2x2x1
jax: 0.10.0
libtpu: 0.0.40
codegen_flags: <defaults>
</compile_context>

<pallas_src>
import functools

import jax
import jax.numpy as jnp
from jax.experimental import pallas as pl
from jax.experimental.pallas import tpu as pltpu

_MAX_BLOCK_ELEMS = 2048 * 512  # ~4 MiB f32 / 2 MiB bf16 per input block


def _sublane_multiple(dtype):
    # f32/i32 -> 8 rows/sublane-tile, bf16/f16 -> 16, int8/fp8 -> 32.
    return {4: 8, 2: 16, 1: 32}.get(jnp.dtype(dtype).itemsize, 8)


def _entropy_kernel(x_ref, o_ref, *, rows, tile_rows, need_mask, group_reduce):
    """Accumulate sum(x * log(x)) of the current block into o_ref."""
    k = pl.program_id(0)

    @pl.when(k == 0)
    def _():
        o_ref[...] = jnp.zeros_like(o_ref)

    x = x_ref[...].astype(jnp.float32)          # (tile_rows, lane)
    if need_mask:
        # Mask out-of-bounds rows of the ragged final block: 1.0 -> zero entropy.
        gid = jax.lax.broadcasted_iota(jnp.int32, x.shape, 0) + k * tile_rows
        x = jnp.where(gid < rows, x, 1.0)
    t = x * jnp.log(x)                           # VPU + EUP only
    if group_reduce:
        # VALU-only reduce: groups of 8 rows are distinct vregs; summing over
        # the leading axis is plain elementwise adds (no XLU).
        t = t.reshape(tile_rows // 8, 8, x.shape[1]).sum(axis=0)
    o_ref[...] += t                              # tiny resident accumulator


@functools.partial(jax.jit, static_argnames=("max_block_elems",))
def _entropy_mean_one(conf, *, max_block_elems=_MAX_BLOCK_ELEMS):
    """jnp.mean(-conf * log(conf)) for one tensor via a single pallas_call."""
    n = conf.size                                # static at trace time
    flat = jnp.reshape(conf, (-1,))

    # Widest lane count that divides n -> copy-free lane-dense view.
    lane = None
    for cand in (512, 256, 128):
        if n % cand == 0:
            lane = cand
            break
    if lane is None:
        lane = 512
        pad = -n % lane
        # TODO(synk): replace this pad-copy with a manual-DMA (pl.ANY) ragged
        # tail masked from a scalar-prefetched length; only hit when n % 128 != 0.
        flat = jnp.concatenate([flat, jnp.ones((pad,), flat.dtype)])
    rows = flat.shape[0] // lane
    x2d = flat.reshape(rows, lane)

    sub = _sublane_multiple(conf.dtype)
    if rows >= sub:
        max_rows = max(sub, (max_block_elems // lane) // sub * sub)
        tile_rows = min(max_rows, (rows // sub) * sub)   # multiple of 8/16/32
        group_reduce = True
        acc_rows = 8
    else:
        # Tiny tensor: single block equal to the full (rows, lane) view.
        tile_rows = rows
        group_reduce = False
        acc_rows = rows
    kblocks = pl.cdiv(rows, tile_rows)
    need_mask = (rows % tile_rows) != 0

    kernel = functools.partial(
        _entropy_kernel, rows=rows, tile_rows=tile_rows,
        need_mask=need_mask, group_reduce=group_reduce)

    out = pl.pallas_call(
        kernel,
        out_shape=jax.ShapeDtypeStruct((acc_rows, lane), jnp.float32),
        grid_spec=pltpu.PrefetchScalarGridSpec(
            num_scalar_prefetch=0,
            grid=(kblocks,),
            in_specs=[pl.BlockSpec((tile_rows, lane), lambda k: (k, 0))],
            out_specs=pl.BlockSpec((acc_rows, lane), lambda k: (0, 0)),
        ),
        compiler_params=pltpu.CompilerParams(
            dimension_semantics=("arbitrary",),
            vmem_limit_bytes=40 << 20,
        ),
    )(x2d)

    # mean(-x*log(x)) == (-1/n) * sum(x*log(x)); -1/n is a trace-time constant.
    return jnp.sum(out) * (-1.0 / n)


def sparse_loss(confs, *, max_block_elems=_MAX_BLOCK_ELEMS):
    """JAX/Pallas equivalent of SparseLoss.forward(confs)."""
    if not confs:
        return jnp.float32(0.0)
    total = _entropy_mean_one(confs[0], max_block_elems=max_block_elems)
    for conf in confs[1:]:
        total = total + _entropy_mean_one(conf, max_block_elems=max_block_elems)
    return total


def _reference(confs):
    return sum(jnp.mean(-c * jnp.log(c)) for c in confs)


if __name__ == "__main__":
    key = jax.random.PRNGKey(0)
    k1, k2, k3, k4, k5 = jax.random.split(key, 5)
    # A list of "confidence" tensors (positive, in (0,1)) of various shapes,
    # covering: tiny single-block, multi-of-lane, ragged-rows (masked tail),
    # and a non-multiple-of-128 size (lane-tail pad path).
    confs = [
        jax.random.uniform(k1, (2, 4, 16, 16), jnp.float32, 0.05, 1.0),    # 2048
        jax.random.uniform(k2, (2, 8, 8, 8), jnp.float32, 0.05, 1.0),      # 1024
        jax.random.uniform(k3, (2, 16, 16, 16), jnp.float32, 0.05, 1.0),   # 8192
        jax.random.uniform(k4, (2, 10, 16, 32), jnp.float32, 0.05, 1.0),   # 10240
        jax.random.uniform(k5, (3, 5, 7, 11), jnp.float32, 0.05, 1.0),     # 1155
    ]

    ref = _reference(confs)

    out = jax.block_until_ready(sparse_loss(confs))
    assert jnp.allclose(out, ref, rtol=1e-5, atol=1e-6), (out, ref)

    # Also exercise the multi-block + masked-final-block path with tiny tiles.
    out_small = jax.block_until_ready(sparse_loss(confs, max_block_elems=2048))
    assert jnp.allclose(out_small, ref, rtol=1e-5, atol=1e-6), (out_small, ref)

    print("KERNEL_OK")
</pallas_src>

<mosaic_0001>
module attributes {stable_mosaic.version = 11 : i64} {
  func.func @_entropy_kernel(%arg0: i32, %arg1: memref<4x512xf32, #tpu.memory_space<vmem>>, %arg2: memref<4x512xf32, #tpu.memory_space<vmem>>) attributes {dimension_semantics = [#tpu.dimension_semantics<arbitrary>], iteration_bounds = array<i64: 1>, scalar_prefetch = 0 : i64, scratch_operands = 0 : i64, tpu.core_type = #tpu.core_type<tc>, window_params = [{transform_indices = @transform_0, window_bounds = array<i64: 4, 512>}, {pipeline_mode = #tpu.pipeline_mode<synchronous>, transform_indices = @transform_1, window_bounds = array<i64: 4, 512>}]} {
    %c0_i32 = arith.constant 0 : i32
    %0 = arith.cmpi eq, %arg0, %c0_i32 : i32
    %1 = arith.extui %0 : i1 to i32
    %c0_i32_0 = arith.constant 0 : i32
    %2 = arith.cmpi ne, %1, %c0_i32_0 : i32
    scf.if %2 {
      %cst = arith.constant 0.000000e+00 : f32
      %9 = vector.broadcast %cst : f32 to vector<4x512xf32>
      %c0_6 = arith.constant 0 : index
      %c0_7 = arith.constant 0 : index
      %10 = vector.load %arg2[%c0_6, %c0_7] : memref<4x512xf32, #tpu.memory_space<vmem>>, vector<4x512xf32>
      tpu.vector_store %arg2[%c0_6, %c0_7], %9 {strides = array<i32>} : memref<4x512xf32, #tpu.memory_space<vmem>>, vector<4x512xf32>,
    } else {
    }
    %c0 = arith.constant 0 : index
    %c0_1 = arith.constant 0 : index
    %3 = vector.load %arg1[%c0, %c0_1] : memref<4x512xf32, #tpu.memory_space<vmem>>, vector<4x512xf32>
    %4 = math.log %3 : vector<4x512xf32>
    %5 = arith.mulf %3, %4 : vector<4x512xf32>
    %c0_2 = arith.constant 0 : index
    %c0_3 = arith.constant 0 : index
    %6 = vector.load %arg2[%c0_2, %c0_3] : memref<4x512xf32, #tpu.memory_space<vmem>>, vector<4x512xf32>
    %7 = arith.addf %6, %5 : vector<4x512xf32>
    %c0_4 = arith.constant 0 : index
    %c0_5 = arith.constant 0 : index
    %8 = vector.load %arg2[%c0_4, %c0_5] : memref<4x512xf32, #tpu.memory_space<vmem>>, vector<4x512xf32>
    tpu.vector_store %arg2[%c0_4, %c0_5], %7 {strides = array<i32>} : memref<4x512xf32, #tpu.memory_space<vmem>>, vector<4x512xf32>,
    return
  }
  func.func @transform_0(%arg0: i32) -> (i32, i32) {
    %c0_i32 = arith.constant 0 : i32
    %c0_i32_0 = arith.constant 0 : i32
    return %arg0, %c0_i32 : i32, i32
  }
  func.func @transform_1(%arg0: i32) -> (i32, i32) {
    %c0_i32 = arith.constant 0 : i32
    %c0_i32_0 = arith.constant 0 : i32
    %c0_i32_1 = arith.constant 0 : i32
    return %c0_i32, %c0_i32_0 : i32, i32
  }
}

</mosaic_0001>

<bundles_post_ra>
// kernel: _entropy_mean_one.1
= control target key start
LH: loop header
LB: loop body
LE: loop exit
PB: predicated region body
PF: predicated region fallthrough
CT: control target
= control target key end

     0   :  { %s59_s0 = inlined_call_operand.vmem [shape: f32[4,512], index: 0, kind: input, shape index: {}]   ;;  %s60_s1 = inlined_call_operand.vmem [shape: f32[4,512], index: 1, kind: output, shape index: {}]  }
   0x1   :  { %v14_v0 = vld [vmem:[%s59_s0] sm:$0xff]  ;;  %v15_v1 = vld [vmem:[%s59_s0 + $0x8] sm:$0xff] }
   0x2   :  { %33 = vlog2.f32 %v14_v0 }
   0x3   :  { %35 = vlog2.f32 %v15_v1 }
   0xc   :  { %v34_v2 = vpop.eup %33 }
   0xd   :  { %v36_v3 = vpop.eup %35  ;;  %v17_v4 = vmul.f32 0.6931472, %v34_v2 }
   0xe   :  { %v19_v5 = vmul.f32 0.6931472, %v36_v3 }
   0xf   :  { %v20_v6 = vmul.f32 %v17_v4, %v14_v0 }
  0x10   :  { %v21_v7 = vmul.f32 %v19_v5, %v15_v1 }
  0x11   :  { %26 = vst [vmem:[%s60_s1] sm:$0xff] %v20_v6 }
  0x12   :  { %27 = vst [vmem:[%s60_s1 + $0x8] sm:$0xff] %v21_v7 }

</bundles_post_ra>
